<compile_context>
chip_gen: v7x
topology: tpu7x:2x2x1
jax: 0.10.0
libtpu: 0.0.40
codegen_flags: <defaults>
</compile_context>

<pallas_src>
import functools

import jax
import jax.numpy as jnp
import numpy as np
from jax.experimental import pallas as pl
from jax.experimental.pallas import tpu as pltpu


def _round_up(x, m):
    return ((x + m - 1) // m) * m


def _vmem_capacity_bytes():
    """Physical VMEM of the current generation (fallback: v7x's 64 MiB)."""
    try:
        return int(pltpu.get_tpu_info().vmem_capacity_bytes)
    except Exception:
        return 64 * 1024 * 1024


def _const_block_spec(shape):
    """BlockSpec for a grid-invariant operand: single-buffer when supported."""
    index_map = lambda i: (0,) * len(shape)
    buffered = getattr(pl, "Buffered", None)
    if buffered is not None:
        try:
            return pl.BlockSpec(shape, index_map, pipeline_mode=buffered(1))
        except TypeError:
            pass
    return pl.BlockSpec(shape, index_map)


def _choose_tile_e(E, D_pad, S, itemsize, vmem_budget, tile_e):
    """Edge tile: DMA-volume sized, VMEM-clamped, padding-waste minimized."""
    e_ceil = _round_up(max(E, 1), 128)
    if tile_e is not None:
        target = max(128, min(_round_up(tile_e, 128), e_ceil))
    else:
        # Size the per-step input DMA ((S+2) * tile * D_pad bytes) to ~4 MiB.
        dma_target = 4 * 1024 * 1024
        target = _round_up(max(dma_target // ((S + 2) * D_pad * itemsize), 1), 128)
        target = max(128, min(target, e_ceil))
    # Keep >= 2 grid steps whenever E allows it so v7x's 2 TensorCores both work.
    if e_ceil >= 256:
        target = min(target, _round_up(-(-E // 2), 128))

    def est(t):
        return (2 * (S + 2) * t * D_pad * itemsize     # double-buffered src + dst blocks
                + 2 * D_pad * D_pad * itemsize         # resident DxD weights (single-buffered)
                + 2 * (S + 1) * t * 4                  # double-buffered lane-dense output
                + 4 * t * D_pad * 4)                   # f32 intermediates (h_src + slab temps)

    while target > 128 and est(target) > int(0.8 * vmem_budget):
        target -= 128

    # Among candidate tiles <= target pick minimal padded-edge waste
    # (ties -> larger tile, fewer grid steps).
    best_t, best_key = 128, None
    t = 128
    while t <= target:
        key = (_round_up(E, t) - E, -t)
        if best_key is None or key < best_key:
            best_key, best_t = key, t
        t += 128
    return best_t, est(best_t)


def _edge_predictor_kernel(src_ref, dst_ref,
                           wsrc_ref, bsrc_ref,
                           wdst_ref, bdst_ref,
                           wout_ref, bout_ref,
                           out_ref):
    # src_ref : (TE, D)          source rows for this edge tile
    # dst_ref : (S+1, TE, D)     slab 0 = positive dst rows, slabs 1..S = neg
    # wsrc/wdst : (D, D) pre-transposed (x @ W^T form); bsrc/bdst : (1, D) f32
    # wout : (1, D) f32 row; bout : (1, 1) f32 scalar in SMEM
    # out_ref : (S+1, TE)        lane-dense scores (edges on the 128-lane axis)
    sp1 = dst_ref.shape[0]

    # src_fc once per edge tile (one MXU matmul, f32 accumulation).
    h_src = jnp.dot(src_ref[...], wsrc_ref[...],
                    preferred_element_type=jnp.float32) + bsrc_ref[...]

    w_out = wout_ref[...].astype(jnp.float32)      # (1, D)
    b_dst = bdst_ref[...]                          # (1, D) f32
    b_out = bout_ref[0, 0]                         # scalar from SMEM

    # Slab-wise dst matmul + epilogue: only ~one (TE, D) f32 temporary set is
    # live at a time (bounds VMEM / vreg pressure on v7x while keeping the edge
    # tile large).  S+1 is a small static constant -> the loop fully unrolls.
    # TODO(synk): on v6e/v7x the add+relu+scale could run in bf16 with f32
    # lane-sum accumulation to halve VALU work; kept f32 so the body is v5e-safe.
    scores = []
    for s in range(sp1):
        h_dst = jnp.dot(dst_ref[s], wdst_ref[...],
                        preferred_element_type=jnp.float32) + b_dst
        h_edge = jnp.maximum(h_src + h_dst, 0.0)            # (TE, D) f32
        # out_fc (D -> 1) as VPU multiply + XLU lane reduce (no degenerate
        # N=1 MXU matmul).
        scores.append(jnp.sum(h_edge * w_out, axis=-1))      # (TE,)

    out_ref[...] = jnp.stack(scores, axis=0) + b_out          # single unmasked store


def edge_predictor_pallas(h, params, neg_samples=1, tile_e=None,
                          compute_dtype=jnp.bfloat16):
    """Pallas implementation of EdgePredictor.forward(h, neg_samples).

    params: dict with torch-shaped tensors
      w_src (D,D), b_src (D,), w_dst (D,D), b_dst (D,), w_out (1,D), b_out (1,)
    compute_dtype: dtype for activations + DxD weights (default bf16 -- halves
      the dominant HBM traffic; dots accumulate in f32, epilogue is f32).
      Pass None for an all-f32 path.
    tile_e: optional edge-tile override (rounded to a multiple of 128);
      default picks the tile from DMA volume and the VMEM budget.
    """
    N, D = h.shape
    S = int(neg_samples)
    E = N // (S + 2)

    in_dtype = jnp.dtype(compute_dtype) if compute_dtype is not None else jnp.dtype(jnp.float32)
    itemsize = in_dtype.itemsize

    # Lane-dim padding (full vreg lanes / MXU contraction rows even for small D).
    D_pad = _round_up(max(D, 128), 128)

    # Generation-aware VMEM budget with compiler headroom (~60 MiB on v7x,
    # ~120 MiB on 128 MiB parts), floored at the 32 MiB scoped default.
    vmem_phys = _vmem_capacity_bytes()
    vmem_budget = max(32 * 1024 * 1024, (vmem_phys * 15) // 16)

    tile_e_eff, vmem_est = _choose_tile_e(E, D_pad, S, itemsize, vmem_budget, tile_e)
    E_pad = _round_up(E, tile_e_eff)
    num_tiles = E_pad // tile_e_eff
    pe, pd = E_pad - E, D_pad - D

    src = h[:E]
    dst = h[E:(S + 2) * E].reshape(S + 1, E, D)        # slab 0 = pos, slabs 1.. = neg

    src_p = jnp.pad(src, ((0, pe), (0, pd))).astype(in_dtype)
    dst_p = jnp.pad(dst, ((0, 0), (0, pe), (0, pd))).astype(in_dtype)

    w_src_t = jnp.pad(params["w_src"].T, ((0, pd), (0, pd))).astype(in_dtype)
    w_dst_t = jnp.pad(params["w_dst"].T, ((0, pd), (0, pd))).astype(in_dtype)
    b_src = jnp.pad(params["b_src"], (0, pd)).reshape(1, D_pad).astype(jnp.float32)
    b_dst = jnp.pad(params["b_dst"], (0, pd)).reshape(1, D_pad).astype(jnp.float32)
    w_out = jnp.pad(params["w_out"], ((0, 0), (0, pd))).astype(jnp.float32)
    b_out = params["b_out"].reshape(1, 1).astype(jnp.float32)

    grid_spec = pltpu.PrefetchScalarGridSpec(
        num_scalar_prefetch=0,
        grid=(num_tiles,),
        in_specs=[
            pl.BlockSpec((tile_e_eff, D_pad), lambda i: (i, 0)),            # src rows
            pl.BlockSpec((S + 1, tile_e_eff, D_pad), lambda i: (0, i, 0)),  # pos+neg dst slabs
            _const_block_spec((D_pad, D_pad)),                              # W_src^T (resident)
            _const_block_spec((1, D_pad)),                                  # b_src
            _const_block_spec((D_pad, D_pad)),                              # W_dst^T (resident)
            _const_block_spec((1, D_pad)),                                  # b_dst
            _const_block_spec((1, D_pad)),                                  # w_out row
            pl.BlockSpec(memory_space=pltpu.MemorySpace.SMEM),              # b_out scalar
        ],
        out_specs=pl.BlockSpec((S + 1, tile_e_eff), lambda i: (0, i)),      # lane-dense scores
    )

    # Advisory cost estimate so XLA can schedule/overlap the wrapper slicing.
    flops = 2 * (S + 2) * E_pad * D_pad * D_pad + 4 * (S + 1) * E_pad * D_pad
    bytes_accessed = ((S + 2) * E_pad * D_pad * itemsize
                      + 2 * D_pad * D_pad * itemsize
                      + 3 * D_pad * 4 + 4
                      + (S + 1) * E_pad * 4)
    cost = pl.CostEstimate(flops=int(flops), transcendentals=0,
                           bytes_accessed=int(bytes_accessed))

    vmem_limit = int(min(vmem_budget, max(32 * 1024 * 1024, 2 * vmem_est)))

    out = pl.pallas_call(
        _edge_predictor_kernel,
        grid_spec=grid_spec,
        out_shape=jax.ShapeDtypeStruct((S + 1, E_pad), jnp.float32),
        compiler_params=pltpu.CompilerParams(
            dimension_semantics=("parallel",),
            vmem_limit_bytes=vmem_limit,
        ),
        cost_estimate=cost,
    )(src_p, dst_p, w_src_t, b_src, w_dst_t, b_dst, w_out, b_out)

    scores = out[:, :E]                                # drop edge padding
    pos_out = scores[0].reshape(E, 1)
    neg_out = scores[1:].reshape(S * E, 1)             # row s*E + e, matches torch tile order
    return pos_out, neg_out


def init_params(dim_in, key):
    """Deterministic init matching torch.nn.Linear parameter shapes."""
    bound = 1.0 / np.sqrt(dim_in)
    ks = jax.random.split(key, 6)
    u = lambda k, shape: jax.random.uniform(k, shape, jnp.float32, -bound, bound)
    return {
        "w_src": u(ks[0], (dim_in, dim_in)),   # (out, in)
        "b_src": u(ks[1], (dim_in,)),
        "w_dst": u(ks[2], (dim_in, dim_in)),
        "b_dst": u(ks[3], (dim_in,)),
        "w_out": u(ks[4], (1, dim_in)),
        "b_out": u(ks[5], (1,)),
    }


def edge_predictor_ref(h, params, neg_samples=1):
    """Pure-JAX reference mirroring the PyTorch forward."""
    E = h.shape[0] // (neg_samples + 2)
    h_src = h[:E] @ params["w_src"].T + params["b_src"]
    h_pos_dst = h[E:2 * E] @ params["w_dst"].T + params["b_dst"]
    h_neg_dst = h[2 * E:] @ params["w_dst"].T + params["b_dst"]
    h_pos_edge = jnp.maximum(h_src + h_pos_dst, 0.0)
    h_neg_edge = jnp.maximum(jnp.tile(h_src, (neg_samples, 1)) + h_neg_dst, 0.0)
    pos = h_pos_edge @ params["w_out"].T + params["b_out"]
    neg = h_neg_edge @ params["w_out"].T + params["b_out"]
    return pos, neg


if __name__ == "__main__":
    dim_in = 32
    neg_samples = 2
    num_edge = 16
    N = (neg_samples + 2) * num_edge   # 64 rows total

    key = jax.random.PRNGKey(0)
    k_h, k_p = jax.random.split(key)
    h = jax.random.normal(k_h, (N, dim_in), dtype=jnp.float32)
    params = init_params(dim_in, k_p)

    pos_ref, neg_ref = edge_predictor_ref(h, params, neg_samples)

    # All-f32 path: tight tolerance.
    fn_f32 = jax.jit(functools.partial(edge_predictor_pallas,
                                       neg_samples=neg_samples,
                                       compute_dtype=None))
    pos32, neg32 = fn_f32(h, params)
    jax.block_until_ready((pos32, neg32))
    np.testing.assert_allclose(np.asarray(pos32), np.asarray(pos_ref),
                               rtol=1e-5, atol=1e-5)
    np.testing.assert_allclose(np.asarray(neg32), np.asarray(neg_ref),
                               rtol=1e-5, atol=1e-5)

    # Default bf16 path (halved HBM traffic): looser tolerance as expected.
    fn_bf16 = jax.jit(functools.partial(edge_predictor_pallas,
                                        neg_samples=neg_samples))
    pos_bf, neg_bf = fn_bf16(h, params)
    jax.block_until_ready((pos_bf, neg_bf))
    np.testing.assert_allclose(np.asarray(pos_bf), np.asarray(pos_ref),
                               rtol=5e-2, atol=5e-2)
    np.testing.assert_allclose(np.asarray(neg_bf), np.asarray(neg_ref),
                               rtol=5e-2, atol=5e-2)

    print("KERNEL_OK")
</pallas_src>

<mosaic_0001>
module attributes {stable_mosaic.version = 11 : i64} {
  func.func @_edge_predictor_kernel(%arg0: i32, %arg1: memref<128x128xf32, #tpu.memory_space<vmem>>, %arg2: memref<3x128x128xf32, #tpu.memory_space<vmem>>, %arg3: memref<128x128xf32, #tpu.memory_space<vmem>>, %arg4: memref<1x128xf32, #tpu.memory_space<vmem>>, %arg5: memref<128x128xf32, #tpu.memory_space<vmem>>, %arg6: memref<1x128xf32, #tpu.memory_space<vmem>>, %arg7: memref<1x128xf32, #tpu.memory_space<vmem>>, %arg8: memref<1x1xf32, #tpu.memory_space<smem>>, %arg9: memref<3x128xf32, #tpu.memory_space<vmem>>) attributes {dimension_semantics = [#tpu.dimension_semantics<parallel>], iteration_bounds = array<i64: 1>, scalar_prefetch = 0 : i64, scratch_operands = 0 : i64, tpu.core_type = #tpu.core_type<tc>, window_params = [{transform_indices = @transform_0, window_bounds = array<i64: 128, 128>}, {transform_indices = @transform_1, window_bounds = array<i64: 3, 128, 128>}, {pipeline_mode = #tpu.pipeline_mode<synchronous>, transform_indices = @transform_2, window_bounds = array<i64: 128, 128>}, {pipeline_mode = #tpu.pipeline_mode<synchronous>, transform_indices = @transform_3, window_bounds = array<i64: 1, 128>}, {pipeline_mode = #tpu.pipeline_mode<synchronous>, transform_indices = @transform_4, window_bounds = array<i64: 128, 128>}, {pipeline_mode = #tpu.pipeline_mode<synchronous>, transform_indices = @transform_5, window_bounds = array<i64: 1, 128>}, {pipeline_mode = #tpu.pipeline_mode<synchronous>, transform_indices = @transform_6, window_bounds = array<i64: 1, 128>}, {transform_indices = @transform_7, window_bounds = array<i64: 1, 1>}, {transform_indices = @transform_8, window_bounds = array<i64: 3, 128>}]} {
    %c0 = arith.constant 0 : index
    %c0_0 = arith.constant 0 : index
    %0 = vector.load %arg1[%c0, %c0_0] : memref<128x128xf32, #tpu.memory_space<vmem>>, vector<128x128xf32>
    %c0_1 = arith.constant 0 : index
    %c0_2 = arith.constant 0 : index
    %1 = vector.load %arg3[%c0_1, %c0_2] : memref<128x128xf32, #tpu.memory_space<vmem>>, vector<128x128xf32>
    %cst = arith.constant dense<0.000000e+00> : vector<128x128xf32>
    %2 = tpu.matmul %0, %1, %cst {dimension_numbers = #tpu.dot_dimension_numbers<[1], [0], [0], [1], [0, 0, 1, 1], [], []>} : vector<128x128xf32>, vector<128x128xf32>, vector<128x128xf32> -> vector<128x128xf32>
    %c0_3 = arith.constant 0 : index
    %c0_4 = arith.constant 0 : index
    %3 = vector.load %arg4[%c0_3, %c0_4] : memref<1x128xf32, #tpu.memory_space<vmem>>, vector<1x128xf32>
    %4 = vector.broadcast %3 : vector<1x128xf32> to vector<128x128xf32>
    %5 = arith.addf %2, %4 : vector<128x128xf32>
    %c0_5 = arith.constant 0 : index
    %c0_6 = arith.constant 0 : index
    %6 = vector.load %arg7[%c0_5, %c0_6] : memref<1x128xf32, #tpu.memory_space<vmem>>, vector<1x128xf32>
    %c0_7 = arith.constant 0 : index
    %c0_8 = arith.constant 0 : index
    %7 = vector.load %arg6[%c0_7, %c0_8] : memref<1x128xf32, #tpu.memory_space<vmem>>, vector<1x128xf32>
    %c0_9 = arith.constant 0 : index
    %c0_10 = arith.constant 0 : index
    %8 = memref.load %arg8[%c0_9, %c0_10] : memref<1x1xf32, #tpu.memory_space<smem>>
    %c0_11 = arith.constant 0 : index
    %c0_12 = arith.constant 0 : index
    %c0_13 = arith.constant 0 : index
    %9 = vector.load %arg2[%c0_11, %c0_12, %c0_13] : memref<3x128x128xf32, #tpu.memory_space<vmem>>, vector<1x128x128xf32>
    %10 = vector.shape_cast %9 : vector<1x128x128xf32> to vector<128x128xf32>
    %c0_14 = arith.constant 0 : index
    %c0_15 = arith.constant 0 : index
    %11 = vector.load %arg5[%c0_14, %c0_15] : memref<128x128xf32, #tpu.memory_space<vmem>>, vector<128x128xf32>
    %cst_16 = arith.constant dense<0.000000e+00> : vector<128x128xf32>
    %12 = tpu.matmul %10, %11, %cst_16 {dimension_numbers = #tpu.dot_dimension_numbers<[1], [0], [0], [1], [0, 0, 1, 1], [], []>} : vector<128x128xf32>, vector<128x128xf32>, vector<128x128xf32> -> vector<128x128xf32>
    %13 = vector.broadcast %7 : vector<1x128xf32> to vector<128x128xf32>
    %14 = arith.addf %12, %13 : vector<128x128xf32>
    %15 = arith.addf %5, %14 : vector<128x128xf32>
    %cst_17 = arith.constant 0.000000e+00 : f32
    %16 = vector.broadcast %cst_17 : f32 to vector<128x128xf32>
    %17 = arith.maximumf %15, %16 : vector<128x128xf32>
    %18 = vector.broadcast %6 : vector<1x128xf32> to vector<128x128xf32>
    %19 = arith.mulf %17, %18 : vector<128x128xf32>
    %cst_18 = arith.constant dense<0.000000e+00> : vector<128xf32>
    %20 = vector.multi_reduction <add>, %19, %cst_18 [1] : vector<128x128xf32> to vector<128xf32>
    %c1 = arith.constant 1 : index
    %c0_19 = arith.constant 0 : index
    %c0_20 = arith.constant 0 : index
    %21 = vector.load %arg2[%c1, %c0_19, %c0_20] : memref<3x128x128xf32, #tpu.memory_space<vmem>>, vector<1x128x128xf32>
    %22 = vector.shape_cast %21 : vector<1x128x128xf32> to vector<128x128xf32>
    %c0_21 = arith.constant 0 : index
    %c0_22 = arith.constant 0 : index
    %23 = vector.load %arg5[%c0_21, %c0_22] : memref<128x128xf32, #tpu.memory_space<vmem>>, vector<128x128xf32>
    %cst_23 = arith.constant dense<0.000000e+00> : vector<128x128xf32>
    %24 = tpu.matmul %22, %23, %cst_23 {dimension_numbers = #tpu.dot_dimension_numbers<[1], [0], [0], [1], [0, 0, 1, 1], [], []>} : vector<128x128xf32>, vector<128x128xf32>, vector<128x128xf32> -> vector<128x128xf32>
    %25 = vector.broadcast %7 : vector<1x128xf32> to vector<128x128xf32>
    %26 = arith.addf %24, %25 : vector<128x128xf32>
    %27 = arith.addf %5, %26 : vector<128x128xf32>
    %cst_24 = arith.constant 0.000000e+00 : f32
    %28 = vector.broadcast %cst_24 : f32 to vector<128x128xf32>
    %29 = arith.maximumf %27, %28 : vector<128x128xf32>
    %30 = vector.broadcast %6 : vector<1x128xf32> to vector<128x128xf32>
    %31 = arith.mulf %29, %30 : vector<128x128xf32>
    %cst_25 = arith.constant dense<0.000000e+00> : vector<128xf32>
    %32 = vector.multi_reduction <add>, %31, %cst_25 [1] : vector<128x128xf32> to vector<128xf32>
    %c2 = arith.constant 2 : index
    %c0_26 = arith.constant 0 : index
    %c0_27 = arith.constant 0 : index
    %33 = vector.load %arg2[%c2, %c0_26, %c0_27] : memref<3x128x128xf32, #tpu.memory_space<vmem>>, vector<1x128x128xf32>
    %34 = vector.shape_cast %33 : vector<1x128x128xf32> to vector<128x128xf32>
    %c0_28 = arith.constant 0 : index
    %c0_29 = arith.constant 0 : index
    %35 = vector.load %arg5[%c0_28, %c0_29] : memref<128x128xf32, #tpu.memory_space<vmem>>, vector<128x128xf32>
    %cst_30 = arith.constant dense<0.000000e+00> : vector<128x128xf32>
    %36 = tpu.matmul %34, %35, %cst_30 {dimension_numbers = #tpu.dot_dimension_numbers<[1], [0], [0], [1], [0, 0, 1, 1], [], []>} : vector<128x128xf32>, vector<128x128xf32>, vector<128x128xf32> -> vector<128x128xf32>
    %37 = vector.broadcast %7 : vector<1x128xf32> to vector<128x128xf32>
    %38 = arith.addf %36, %37 : vector<128x128xf32>
    %39 = arith.addf %5, %38 : vector<128x128xf32>
    %cst_31 = arith.constant 0.000000e+00 : f32
    %40 = vector.broadcast %cst_31 : f32 to vector<128x128xf32>
    %41 = arith.maximumf %39, %40 : vector<128x128xf32>
    %42 = vector.broadcast %6 : vector<1x128xf32> to vector<128x128xf32>
    %43 = arith.mulf %41, %42 : vector<128x128xf32>
    %cst_32 = arith.constant dense<0.000000e+00> : vector<128xf32>
    %44 = vector.multi_reduction <add>, %43, %cst_32 [1] : vector<128x128xf32> to vector<128xf32>
    %45 = vector.shape_cast %20 : vector<128xf32> to vector<1x128xf32>
    %46 = vector.shape_cast %32 : vector<128xf32> to vector<1x128xf32>
    %47 = vector.shape_cast %44 : vector<128xf32> to vector<1x128xf32>
    %48 = tpu.concatenate %45, %46, %47 in 0 : vector<1x128xf32>, vector<1x128xf32>, vector<1x128xf32> -> vector<3x128xf32>
    %49 = vector.broadcast %8 : f32 to vector<3x128xf32>
    %50 = arith.addf %48, %49 : vector<3x128xf32>
    %c0_33 = arith.constant 0 : index
    %c0_34 = arith.constant 0 : index
    %51 = vector.load %arg9[%c0_33, %c0_34] : memref<3x128xf32, #tpu.memory_space<vmem>>, vector<3x128xf32>
    tpu.vector_store %arg9[%c0_33, %c0_34], %50 {strides = array<i32>} : memref<3x128xf32, #tpu.memory_space<vmem>>, vector<3x128xf32>,
    return
  }
  func.func @transform_0(%arg0: i32) -> (i32, i32) {
    %c0_i32 = arith.constant 0 : i32
    %c0_i32_0 = arith.constant 0 : i32
    return %arg0, %c0_i32 : i32, i32
  }
  func.func @transform_1(%arg0: i32) -> (i32, i32, i32) {
    %c0_i32 = arith.constant 0 : i32
    %c0_i32_0 = arith.constant 0 : i32
    %c0_i32_1 = arith.constant 0 : i32
    return %c0_i32, %arg0, %c0_i32_0 : i32, i32, i32
  }
  func.func @transform_2(%arg0: i32) -> (i32, i32) {
    %c0_i32 = arith.constant 0 : i32
    %c0_i32_0 = arith.constant 0 : i32
    %c0_i32_1 = arith.constant 0 : i32
    return %c0_i32, %c0_i32_0 : i32, i32
  }
  func.func @transform_3(%arg0: i32) -> (i32, i32) {
    %c0_i32 = arith.constant 0 : i32
    %c0_i32_0 = arith.constant 0 : i32
    %c0_i32_1 = arith.constant 0 : i32
    return %c0_i32, %c0_i32_0 : i32, i32
  }
  func.func @transform_4(%arg0: i32) -> (i32, i32) {
    %c0_i32 = arith.constant 0 : i32
    %c0_i32_0 = arith.constant 0 : i32
    %c0_i32_1 = arith.constant 0 : i32
    return %c0_i32, %c0_i32_0 : i32, i32
  }
  func.func @transform_5(%arg0: i32) -> (i32, i32) {
    %c0_i32 = arith.constant 0 : i32
    %c0_i32_0 = arith.constant 0 : i32
    %c0_i32_1 = arith.constant 0 : i32
    return %c0_i32, %c0_i32_0 : i32, i32
  }
  func.func @transform_6(%arg0: i32) -> (i32, i32) {
    %c0_i32 = arith.constant 0 : i32
    %c0_i32_0 = arith.constant 0 : i32
    %c0_i32_1 = arith.constant 0 : i32
    return %c0_i32, %c0_i32_0 : i32, i32
  }
  func.func @transform_7(%arg0: i32) -> (i32, i32) {
    %c0_i32 = arith.constant 0 : i32
    %c0_i32_0 = arith.constant 0 : i32
    %c0_i32_1 = arith.constant 0 : i32
    return %c0_i32, %c0_i32_0 : i32, i32
  }
  func.func @transform_8(%arg0: i32) -> (i32, i32) {
    %c0_i32 = arith.constant 0 : i32
    %c0_i32_0 = arith.constant 0 : i32
    return %c0_i32, %arg0 : i32, i32
  }
}

</mosaic_0001>

<bundles_post_ra>
// kernel: edge_predictor_pallas.1
= control target key start
LH: loop header
LB: loop body
LE: loop exit
PB: predicated region body
PF: predicated region fallthrough
CT: control target
= control target key end

     0   :  { %vm997_vm0 = vcmask 130112   ;;  %vm1004_vm1 = vcmask 195712   ;;  %vm1011_vm2 = vcmask 261312   ;;  %vm1018_vm3 = vcmask 326912   ;;  %s2621_s2 = inlined_call_operand.vmem [shape: f32[128,128], index: 2, kind: input, shape index: {}]   ;;  %s2622_s4 = inlined_call_operand.vmem [shape: f32[128,128], index: 4, kind: input, shape index: {}]   ;;  %s2623_s0 = inlined_call_operand.vmem [shape: f32[128,128], index: 0, kind: input, shape index: {}]   ;;  %s2624_s1 = inlined_call_operand.vmem [shape: f32[3,128,128], index: 1, kind: input, shape index: {}]   ;;  %s2625_s3 = inlined_call_operand.vmem [shape: f32[1,128], index: 3, kind: input, shape index: {}]   ;;  %s2626_s5 = inlined_call_operand.vmem [shape: f32[1,128], index: 5, kind: input, shape index: {}]   ;;  %s2627_s6 = inlined_call_operand.vmem [shape: f32[1,128], index: 6, kind: input, shape index: {}]   ;;  %s2628_s7 = inlined_call_operand.<no memory space> [shape: f32[1,1], index: 7, kind: input, shape index: {}]   ;;  %s2629_s8 = inlined_call_operand.vmem [shape: f32[3,128], index: 8, kind: output, shape index: {}]  }
   0x1   :  { %v46_v0 = vld [vmem:[%s2621_s2] sm:$0xff]  ;;  %v47_v1 = vld [vmem:[%s2621_s2 + $0x8] sm:$0xff]  ;;  %v48_v5 = vld [vmem:[%s2621_s2 + $0x10] sm:$0xff]  ;;  %vm1025_vm4 = vcmask 392512   ;;  %vm1032_vm5 = vcmask 458112   ;;  %vm1039_vm6 = vcmask 523712  }
   0x2   :  { %v233_v2 = vld [vmem:[%s2622_s4] sm:$0xff]  ;;  %v1688_v3 = vpack.c.bf16 %v47_v1, %v46_v0  ;;  %v234_v4 = vld [vmem:[%s2622_s4 + $0x8] sm:$0xff]  ;;  %v49_v6 = vld [vmem:[%s2621_s2 + $0x18] sm:$0xff]  ;;  %vm1046_vm7 = vcmask 589312   ;;  %vm1053_vm8 = vcmask 654912   ;;  %vm1060_vm9 = vcmask 720512  }
   0x3   :  { %v1879_v7 = vpack.c.bf16 %v234_v4, %v233_v2  ;;  %v1692_v8 = vpack.c.bf16 %v49_v6, %v48_v5  ;;  %v235_v9 = vld [vmem:[%s2622_s4 + $0x10] sm:$0xff]  ;;  %v236_v10 = vld [vmem:[%s2622_s4 + $0x18] sm:$0xff]  ;;  %v50_v11 = vld [vmem:[%s2621_s2 + $0x20] sm:$0xff]  ;;  %vm1067_vm10 = vcmask 786112   ;;  %vm1074_vm11 = vcmask 851712  }
   0x4   :  { %1689 = vmatprep.subr.bf16.mxu0 %v1688_v3  ;;  %v1890_v12 = vpack.c.bf16 %v236_v10, %v235_v9  ;;  %v51_v13 = vld [vmem:[%s2621_s2 + $0x28] sm:$0xff]  ;;  %v237_v14 = vld [vmem:[%s2622_s4 + $0x20] sm:$0xff]  ;;  %v52_v18 = vld [vmem:[%s2621_s2 + $0x30] sm:$0xff]  ;;  %vm1081_vm12 = vcmask 917312   ;;  %vm1088_vm13 = vcmask 982912   ;;  %vm1095_vm14 = vcmask 1048512  }
   0x5   :  { %v238_v15 = vld [vmem:[%s2622_s4 + $0x28] sm:$0xff]  ;;  %1721 = vmatprep.subr.bf16.mxu1 %v1879_v7  ;;  %1691 = vmatpush3.bf16.msra.mxu0 %v1688_v3  ;;  %v1696_v16 = vpack.c.bf16 %v51_v13, %v50_v11  ;;  %v53_v19 = vld [vmem:[%s2621_s2 + $0x38] sm:$0xff]  ;;  %v239_v20 = vld [vmem:[%s2622_s4 + $0x30] sm:$0xff]  ;;  %vm1290_vm15 = vcmask 1040384  }
   0x6   :  { %1723 = vmatpush3.bf16.msra.mxu1 %v1879_v7  ;;  %1693 = vmatprep.subr.bf16.mxu0 %v1692_v8  ;;  %v1904_v17 = vpack.c.bf16 %v238_v15, %v237_v14  ;;  %v240_v21 = vld [vmem:[%s2622_s4 + $0x38] sm:$0xff]  ;;  %v1700_v22 = vpack.c.bf16 %v53_v19, %v52_v18  ;;  %v54_v24 = vld [vmem:[%s2621_s2 + $0x40] sm:$0xff]  ;;  %v55_v25 = vld [vmem:[%s2621_s2 + $0x48] sm:$0xff] }
   0x7   :  { %1725 = vmatprep.subr.bf16.mxu1 %v1890_v12  ;;  %v1920_v23 = vpack.c.bf16 %v240_v21, %v239_v20  ;;  %v30_v26 = vld [vmem:[%s2623_s0] sm:$0xff]  ;;  %v242_v28 = vld [vmem:[%s2622_s4 + $0x48] sm:$0xff]  ;;  %v1704_v30 = vpack.c.bf16 %v55_v25, %v54_v24  ;;  %v56_v32 = vld [vmem:[%s2621_s2 + $0x50] sm:$0xff] }
   0x8   :  { %v241_v27 = vld [vmem:[%s2622_s4 + $0x40] sm:$0xff]  ;;  %1496 = vmatprep.mubr.f32.mxu0 %v30_v26  ;;  %v57_v33 = vld [vmem:[%s2621_s2 + $0x58] sm:$0xff]  ;;  %v243_v34 = vld [vmem:[%s2622_s4 + $0x50] sm:$0xff] }
   0x9   :  { %1695 = vmatpush3.bf16.msra.mxu0 %v1692_v8  ;;  %v217_v29 = vld [vmem:[%s2624_s1] sm:$0xff]  ;;  %v1942_v31 = vpack.c.bf16 %v242_v28, %v241_v27  ;;  %v244_v35 = vld [vmem:[%s2622_s4 + $0x58] sm:$0xff]  ;;  %v1708_v36 = vpack.c.bf16 %v57_v33, %v56_v32  ;;  %v59_v39 = vld [vmem:[%s2621_s2 + $0x68] sm:$0xff] }
   0xa   :  { %1727 = vmatpush3.bf16.msra.mxu1 %v1890_v12  ;;  %1697 = vmatprep.subr.bf16.mxu0 %v1696_v16  ;;  %v1958_v37 = vpack.c.bf16 %v244_v35, %v243_v34  ;;  %v58_v38 = vld [vmem:[%s2621_s2 + $0x60] sm:$0xff]  ;;  %v246_v41 = vld [vmem:[%s2622_s4 + $0x68] sm:$0xff]  ;;  %v60_v44 = vld [vmem:[%s2621_s2 + $0x70] sm:$0xff] }
   0xb   :  { %1729 = vmatprep.subr.bf16.mxu1 %v1904_v17  ;;  %1552 = vmatprep.mubr.f32.mxu1 %v217_v29  ;;  %v245_v40 = vld [vmem:[%s2622_s4 + $0x60] sm:$0xff]  ;;  %v1712_v42 = vpack.c.bf16 %v59_v39, %v58_v38  ;;  %v61_v45 = vld [vmem:[%s2621_s2 + $0x78] sm:$0xff]  ;;  %v247_v46 = vld [vmem:[%s2622_s4 + $0x70] sm:$0xff] }
   0xc   :  { %v1974_v43 = vpack.c.bf16 %v246_v41, %v245_v40  ;;  %v248_v47 = vld [vmem:[%s2622_s4 + $0x78] sm:$0xff]  ;;  %v1716_v48 = vpack.c.bf16 %v61_v45, %v60_v44  ;;  %v31_v50 = vld [vmem:[%s2623_s0 + $0x8] sm:$0xff]  ;;  %v32_v52 = vld [vmem:[%s2623_s0 + $0x10] sm:$0xff] }
   0xd   :  { %1699 = vmatpush3.bf16.msra.mxu0 %v1696_v16  ;;  %v1990_v49 = vpack.c.bf16 %v248_v47, %v247_v46  ;;  %v218_v51 = vld [vmem:[%s2624_s1 + $0x8] sm:$0xff]  ;;  %v219_v53 = vld [vmem:[%s2624_s1 + $0x10] sm:$0xff]  ;;  %v33_v54 = vld [vmem:[%s2623_s0 + $0x18] sm:$0xff] }
   0xe   :  { %1731 = vmatpush3.bf16.msra.mxu1 %v1904_v17  ;;  %1701 = vmatprep.subr.bf16.mxu0 %v1700_v22  ;;  %v220_v55 = vld [vmem:[%s2624_s1 + $0x18] sm:$0xff]  ;;  %v34_v56 = vld [vmem:[%s2623_s0 + $0x20] sm:$0xff]  ;;  %v35_v58 = vld [vmem:[%s2623_s0 + $0x28] sm:$0xff] }
   0xf   :  { %1733 = vmatprep.subr.bf16.mxu1 %v1920_v23  ;;  %v221_v57 = vld [vmem:[%s2624_s1 + $0x20] sm:$0xff]  ;;  %v222_v59 = vld [vmem:[%s2624_s1 + $0x28] sm:$0xff]  ;;  %v36_v60 = vld [vmem:[%s2623_s0 + $0x30] sm:$0xff] }
  0x10   :  { %v223_v61 = vld [vmem:[%s2624_s1 + $0x30] sm:$0xff]  ;;  %v37_v62 = vld [vmem:[%s2623_s0 + $0x38] sm:$0xff]  ;;  %v38_v0 = vld [vmem:[%s2623_s0 + $0x40] sm:$0xff] }
  0x11   :  { %1703 = vmatpush3.bf16.msra.mxu0 %v1700_v22  ;;  %v224_v63 = vld [vmem:[%s2624_s1 + $0x38] sm:$0xff]  ;;  %v225_v1 = vld [vmem:[%s2624_s1 + $0x40] sm:$0xff]  ;;  %v39_v2 = vld [vmem:[%s2623_s0 + $0x48] sm:$0xff] }
  0x12   :  { %1735 = vmatpush3.bf16.msra.mxu1 %v1920_v23  ;;  %1705 = vmatprep.subr.bf16.mxu0 %v1704_v30  ;;  %v226_v3 = vld [vmem:[%s2624_s1 + $0x48] sm:$0xff]  ;;  %v40_v4 = vld [vmem:[%s2623_s0 + $0x50] sm:$0xff]  ;;  %v41_v6 = vld [vmem:[%s2623_s0 + $0x58] sm:$0xff] }
  0x13   :  { %1737 = vmatprep.subr.bf16.mxu1 %v1942_v31  ;;  %v227_v5 = vld [vmem:[%s2624_s1 + $0x50] sm:$0xff]  ;;  %v42_v8 = vld [vmem:[%s2623_s0 + $0x60] sm:$0xff]  ;;  %v43_v10 = vld [vmem:[%s2623_s0 + $0x68] sm:$0xff] }
  0x14   :  { %v229_v9 = vld [vmem:[%s2624_s1 + $0x60] sm:$0xff]  ;;  %v230_v11 = vld [vmem:[%s2624_s1 + $0x68] sm:$0xff]  ;;  %v231_v13 = vld [vmem:[%s2624_s1 + $0x70] sm:$0xff] }
  0x15   :  { %1707 = vmatpush3.bf16.msra.mxu0 %v1704_v30  ;;  %v45_v14 = vld [vmem:[%s2623_s0 + $0x78] sm:$0xff]  ;;  %v1304_v16 = vld [vmem:[%s2624_s1 + $0x80] sm:$0xff]  ;;  %v1305_v18 = vld [vmem:[%s2624_s1 + $0x88] sm:$0xff] }
  0x16   :  { %1739 = vmatpush3.bf16.msra.mxu1 %v1942_v31  ;;  %1709 = vmatprep.subr.bf16.mxu0 %v1708_v36  ;;  %v232_v15 = vld [vmem:[%s2624_s1 + $0x78] sm:$0xff]  ;;  %v1321_v19 = vld [vmem:[%s2624_s1 + $0x108] sm:$0xff]  ;;  %v1306_v20 = vld [vmem:[%s2624_s1 + $0x90] sm:$0xff] }
  0x17   :  { %1741 = vmatprep.subr.bf16.mxu1 %v1958_v37  ;;  %v1322_v21 = vld [vmem:[%s2624_s1 + $0x110] sm:$0xff]  ;;  %v1307_v22 = vld [vmem:[%s2624_s1 + $0x98] sm:$0xff]  ;;  %v1308_v24 = vld [vmem:[%s2624_s1 + $0xa0] sm:$0xff] }
  0x18   :  { %v1324_v25 = vld [vmem:[%s2624_s1 + $0x120] sm:$0xff]  ;;  %v1309_v26 = vld [vmem:[%s2624_s1 + $0xa8] sm:$0xff]  ;;  %v1310_v28 = vld [vmem:[%s2624_s1 + $0xb0] sm:$0xff] }
  0x19   :  { %1711 = vmatpush3.bf16.msra.mxu0 %v1708_v36  ;;  %v1325_v27 = vld [vmem:[%s2624_s1 + $0x128] sm:$0xff]  ;;  %v1326_v29 = vld [vmem:[%s2624_s1 + $0x130] sm:$0xff]  ;;  %v1311_v30 = vld [vmem:[%s2624_s1 + $0xb8] sm:$0xff] }
  0x1a   :  { %1743 = vmatpush3.bf16.msra.mxu1 %v1958_v37  ;;  %1713 = vmatprep.subr.bf16.mxu0 %v1712_v42  ;;  %v1312_v32 = vld [vmem:[%s2624_s1 + $0xc0] sm:$0xff]  ;;  %v1313_v34 = vld [vmem:[%s2624_s1 + $0xc8] sm:$0xff]  ;;  %v1314_v36 = vld [vmem:[%s2624_s1 + $0xd0] sm:$0xff] }
  0x1b   :  { %1745 = vmatprep.subr.bf16.mxu1 %v1974_v43  ;;  %v1328_v33 = vld [vmem:[%s2624_s1 + $0x140] sm:$0xff]  ;;  %v1329_v35 = vld [vmem:[%s2624_s1 + $0x148] sm:$0xff]  ;;  %v1315_v38 = vld [vmem:[%s2624_s1 + $0xd8] sm:$0xff] }
  0x1c   :  { %v1331_v39 = vld [vmem:[%s2624_s1 + $0x158] sm:$0xff]  ;;  %v1316_v40 = vld [vmem:[%s2624_s1 + $0xe0] sm:$0xff]  ;;  %v1318_v44 = vld [vmem:[%s2624_s1 + $0xf0] sm:$0xff] }
  0x1d   :  { %1715 = vmatpush3.bf16.msra.mxu0 %v1712_v42  ;;  %v1332_v41 = vld [vmem:[%s2624_s1 + $0x160] sm:$0xff]  ;;  %v1317_v42 = vld [vmem:[%s2624_s1 + $0xe8] sm:$0xff]  ;;  %v1334_v45 = vld [vmem:[%s2624_s1 + $0x170] sm:$0xff] }
  0x1e   :  { %1747 = vmatpush3.bf16.msra.mxu1 %v1974_v43  ;;  %1717 = vmatprep.subr.bf16.mxu0 %v1716_v48  ;;  %v1319_v46 = vld [vmem:[%s2624_s1 + $0xf8] sm:$0xff] }
  0x1f   :  { %1749 = vmatprep.subr.bf16.mxu1 %v1990_v49  ;;  %v1335_v47 = vld [vmem:[%s2624_s1 + $0x178] sm:$0xff] }
  0x21   :  { %1719 = vmatpush3.bf16.msra.mxu0 %v1716_v48  ;;  %v2216_v48 = vld [vmem:[%s2625_s3] ss:$0 sm:$0xff] }
  0x22   :  { %1751 = vmatpush3.bf16.msra.mxu1 %v1990_v49  ;;  %1753 = vmatprep.subr.bf16.mxu0 %v1879_v7 }
  0x23   :  { %1785 = vmatprep.subr.bf16.mxu1 %v1879_v7 }
  0x24   :  { %1497 = vmatmul.mubr.f32.vlgmr.msra.gmra.mrb[0].mxu0 %v31_v50 }
  0x25   :  { %1553 = vmatmul.mubr.f32.vlgmr.msra.gmra.mrb[0].mxu1 %v218_v51  ;;  %1755 = vmatpush3.bf16.msra.mxu0 %v1879_v7 }
  0x26   :  { %1787 = vmatpush3.bf16.msra.mxu1 %v1879_v7  ;;  %1499 = vmatprep.mubr.f32.mxu0 %v32_v52  ;;  %v228_v7 = vld [vmem:[%s2624_s1 + $0x58] sm:$0xff] }
  0x27   :  { %1555 = vmatprep.mubr.f32.mxu1 %v219_v53  ;;  %1757 = vmatprep.subr.bf16.mxu0 %v1890_v12 }
  0x28   :  { %1500 = vmatmul.mubr.f32.gmra.mrb[2].mxu0 %v33_v54  ;;  %1789 = vmatprep.subr.bf16.mxu1 %v1890_v12 }
  0x29   :  { %1556 = vmatmul.mubr.f32.gmra.mrb[2].mxu1 %v220_v55  ;;  %1759 = vmatpush3.bf16.msra.mxu0 %v1890_v12 }
  0x2a   :  { %1791 = vmatpush3.bf16.msra.mxu1 %v1890_v12  ;;  %1502 = vmatprep.mubr.f32.mxu0 %v34_v56  ;;  %v44_v12 = vld [vmem:[%s2623_s0 + $0x70] sm:$0xff] }
  0x2b   :  { %1558 = vmatprep.mubr.f32.mxu1 %v221_v57  ;;  %1761 = vmatprep.subr.bf16.mxu0 %v1904_v17 }
  0x2c   :  { %1503 = vmatmul.mubr.f32.gmra.mrb[4].mxu0 %v35_v58  ;;  %1793 = vmatprep.subr.bf16.mxu1 %v1904_v17 }
  0x2d   :  { %1559 = vmatmul.mubr.f32.gmra.mrb[4].mxu1 %v222_v59  ;;  %1763 = vmatpush3.bf16.msra.mxu0 %v1904_v17 }
  0x2e   :  { %1795 = vmatpush3.bf16.msra.mxu1 %v1904_v17  ;;  %1505 = vmatprep.mubr.f32.mxu0 %v36_v60  ;;  %v1320_v17 = vld [vmem:[%s2624_s1 + $0x100] sm:$0xff] }
  0x2f   :  { %1561 = vmatprep.mubr.f32.mxu1 %v223_v61  ;;  %1765 = vmatprep.subr.bf16.mxu0 %v1920_v23 }
  0x30   :  { %1506 = vmatmul.mubr.f32.gmra.mrb[6].mxu0 %v37_v62  ;;  %1797 = vmatprep.subr.bf16.mxu1 %v1920_v23 }
  0x31   :  { %1562 = vmatmul.mubr.f32.gmra.mrb[6].mxu1 %v224_v63  ;;  %1767 = vmatpush3.bf16.msra.mxu0 %v1920_v23 }
  0x32   :  { %1799 = vmatpush3.bf16.msra.mxu1 %v1920_v23  ;;  %1508 = vmatprep.mubr.f32.mxu0 %v38_v0  ;;  %v1323_v23 = vld [vmem:[%s2624_s1 + $0x118] sm:$0xff]  ;;  %v2239_v0 = vld [vmem:[%s2627_s6] ss:$0 sm:$0xff] }
  0x33   :  { %1564 = vmatprep.mubr.f32.mxu1 %v225_v1  ;;  %1769 = vmatprep.subr.bf16.mxu0 %v1942_v31 }
  0x34   :  { %1509 = vmatmul.mubr.f32.gmra.mrb[8].mxu0 %v39_v2  ;;  %1801 = vmatprep.subr.bf16.mxu1 %v1942_v31 }
  0x35   :  { %1565 = vmatmul.mubr.f32.gmra.mrb[8].mxu1 %v226_v3  ;;  %1771 = vmatpush3.bf16.msra.mxu0 %v1942_v31 }
  0x36   :  { %1803 = vmatpush3.bf16.msra.mxu1 %v1942_v31  ;;  %1511 = vmatprep.mubr.f32.mxu0 %v40_v4  ;;  %v1327_v31 = vld [vmem:[%s2624_s1 + $0x138] sm:$0xff] }
  0x37   :  { %1567 = vmatprep.mubr.f32.mxu1 %v227_v5  ;;  %1773 = vmatprep.subr.bf16.mxu0 %v1958_v37 }
  0x38   :  { %1512 = vmatmul.mubr.f32.gmra.mrb[10].mxu0 %v41_v6  ;;  %1805 = vmatprep.subr.bf16.mxu1 %v1958_v37 }
  0x39   :  { %1568 = vmatmul.mubr.f32.gmra.mrb[10].mxu1 %v228_v7  ;;  %1775 = vmatpush3.bf16.msra.mxu0 %v1958_v37 }
  0x3a   :  { %1807 = vmatpush3.bf16.msra.mxu1 %v1958_v37  ;;  %1514 = vmatprep.mubr.f32.mxu0 %v42_v8  ;;  %v1330_v37 = vld [vmem:[%s2624_s1 + $0x150] sm:$0xff] }
  0x3b   :  { %1570 = vmatprep.mubr.f32.mxu1 %v229_v9  ;;  %1777 = vmatprep.subr.bf16.mxu0 %v1974_v43 }
  0x3c   :  { %1515 = vmatmul.mubr.f32.gmra.mrb[12].mxu0 %v43_v10  ;;  %1809 = vmatprep.subr.bf16.mxu1 %v1974_v43 }
  0x3d   :  { %1571 = vmatmul.mubr.f32.gmra.mrb[12].mxu1 %v230_v11  ;;  %1779 = vmatpush3.bf16.msra.mxu0 %v1974_v43 }
  0x3e   :  { %1811 = vmatpush3.bf16.msra.mxu1 %v1974_v43  ;;  %1517 = vmatprep.mubr.f32.mxu0 %v44_v12  ;;  %v1333_v43 = vld [vmem:[%s2624_s1 + $0x168] sm:$0xff] }
  0x3f   :  { %1573 = vmatprep.mubr.f32.mxu1 %v231_v13  ;;  %1781 = vmatprep.subr.bf16.mxu0 %v1990_v49 }
  0x40   :  { %1518 = vmatmul.mubr.f32.gmra.mrb[14].mxu0 %v45_v14  ;;  %1813 = vmatprep.subr.bf16.mxu1 %v1990_v49 }
  0x41   :  { %1574 = vmatmul.mubr.f32.gmra.mrb[14].mxu1 %v232_v15  ;;  %1783 = vmatpush3.bf16.msra.mxu0 %v1990_v49 }
  0x42   :  { %1815 = vmatpush3.bf16.msra.mxu1 %v1990_v49  ;;  %1608 = vmatprep.mubr.f32.mxu0 %v1304_v16  ;;  %v2221_v49 = vld [vmem:[%s2626_s5] ss:$0 sm:$0xff] }
  0x43   :  { %1664 = vmatprep.mubr.f32.mxu1 %v1320_v17 }
  0x44   :  { %1609 = vmatmul.mubr.f32.vlgmr.msra.gmra.mrb[16].mxu0 %v1305_v18 }
  0x45   :  { %1665 = vmatmul.mubr.f32.vlgmr.msra.gmra.mrb[16].mxu1 %v1321_v19  ;;  %1611 = vmatprep.mubr.f32.mxu0 %v1306_v20 }
  0x46   :  { %1667 = vmatprep.mubr.f32.mxu1 %v1322_v21 }
  0x48   :  { %1612 = vmatmul.mubr.f32.gmra.mrb[18].mxu0 %v1307_v22 }
  0x49   :  { %1668 = vmatmul.mubr.f32.gmra.mrb[18].mxu1 %v1323_v23  ;;  %1614 = vmatprep.mubr.f32.mxu0 %v1308_v24 }
  0x4a   :  { %1670 = vmatprep.mubr.f32.mxu1 %v1324_v25 }
  0x4c   :  { %1615 = vmatmul.mubr.f32.gmra.mrb[20].mxu0 %v1309_v26 }
  0x4d   :  { %1671 = vmatmul.mubr.f32.gmra.mrb[20].mxu1 %v1325_v27  ;;  %1617 = vmatprep.mubr.f32.mxu0 %v1310_v28 }
  0x4e   :  { %1673 = vmatprep.mubr.f32.mxu1 %v1326_v29 }
  0x50   :  { %1618 = vmatmul.mubr.f32.gmra.mrb[22].mxu0 %v1311_v30 }
  0x51   :  { %1674 = vmatmul.mubr.f32.gmra.mrb[22].mxu1 %v1327_v31  ;;  %1620 = vmatprep.mubr.f32.mxu0 %v1312_v32 }
  0x52   :  { %1676 = vmatprep.mubr.f32.mxu1 %v1328_v33 }
  0x54   :  { %1621 = vmatmul.mubr.f32.gmra.mrb[24].mxu0 %v1313_v34 }
  0x55   :  { %1677 = vmatmul.mubr.f32.gmra.mrb[24].mxu1 %v1329_v35  ;;  %1623 = vmatprep.mubr.f32.mxu0 %v1314_v36 }
  0x56   :  { %1679 = vmatprep.mubr.f32.mxu1 %v1330_v37 }
  0x58   :  { %1624 = vmatmul.mubr.f32.gmra.mrb[26].mxu0 %v1315_v38 }
  0x59   :  { %1680 = vmatmul.mubr.f32.gmra.mrb[26].mxu1 %v1331_v39  ;;  %1626 = vmatprep.mubr.f32.mxu0 %v1316_v40 }
  0x5a   :  { %1682 = vmatprep.mubr.f32.mxu1 %v1332_v41 }
  0x5c   :  { %1627 = vmatmul.mubr.f32.gmra.mrb[28].mxu0 %v1317_v42 }
  0x5d   :  { %1683 = vmatmul.mubr.f32.gmra.mrb[28].mxu1 %v1333_v43  ;;  %1629 = vmatprep.mubr.f32.mxu0 %v1318_v44 }
  0x5e   :  { %1685 = vmatprep.mubr.f32.mxu1 %v1334_v45 }
  0x60   :  { %1630 = vmatmul.mubr.f32.gmra.mrb[30].mxu0 %v1319_v46 }
  0x61   :  { %1686 = vmatmul.mubr.f32.gmra.mrb[30].mxu1 %v1335_v47 }
  0xf7   :  { %v1498_v50 = vpop.f32.mrb[0].mxu0 }
  0xf8   :  { %v2224_v51 = vadd.f32 %v1498_v50, %v2216_v48  ;;  %v1554_v52 = vpop.f32.mrb[0].mxu1  ;;  %v135_v53 = vpop.f32.mrb[1].mxu0 }
  0xf9   :  { %v327_v54 = vadd.f32 %v1554_v52, %v2221_v49  ;;  %v2228_v55 = vadd.f32 %v2216_v48, %v135_v53  ;;  %v321_v56 = vpop.f32.mrb[1].mxu1 }
  0xfa   :  { %v322_v57 = vadd.f32 %v2221_v49, %v321_v56 }
  0xfb   :  { %v1501_v58 = vpop.f32.mrb[2].mxu0  ;;  %v401_v59 = vadd.f32 %v327_v54, %v2224_v51 }
  0xfc   :  { %v400_v60 = vadd.f32 %v322_v57, %v2228_v55  ;;  %v2234_v61 = vadd.f32 %v1501_v58, %v2216_v48  ;;  %v1557_v62 = vpop.f32.mrb[2].mxu1  ;;  %v145_v63 = vpop.f32.mrb[3].mxu0 }
  0xfd   :  { %v337_v1 = vadd.f32 %v1557_v62, %v2221_v49  ;;  %v2243_v2 = vadd.f32 %v2216_v48, %v145_v63  ;;  %v331_v3 = vpop.f32.mrb[3].mxu1  ;;  %v417_v4 = vmax.f32 %v401_v59, 0.0 }
  0xfe   :  { %v332_v5 = vadd.f32 %v2221_v49, %v331_v3  ;;  %v416_v6 = vmax.f32 %v400_v60, 0.0 }
  0xff   :  { %v403_v7 = vadd.f32 %v337_v1, %v2234_v61  ;;  %v1504_v8 = vpop.f32.mrb[4].mxu0  ;;  %v439_v9 = vmul.f32 %v2239_v0, %v417_v4 }
 0x100   :  { %v402_v10 = vadd.f32 %v332_v5, %v2243_v2  ;;  %v2250_v11 = vadd.f32 %v1504_v8, %v2216_v48  ;;  %v1560_v12 = vpop.f32.mrb[4].mxu1  ;;  %v155_v13 = vpop.f32.mrb[5].mxu0  ;;  %v438_v21 = vmul.f32 %v2239_v0, %v416_v6 }
 0x101   :  { %v347_v14 = vadd.f32 %v1560_v12, %v2221_v49  ;;  %v341_v15 = vpop.f32.mrb[5].mxu1  ;;  %456 = vadd.xlane.f32.xlu0 %v439_v9  ;;  %v2254_v16 = vadd.f32 %v2216_v48, %v155_v13  ;;  %v419_v18 = vmax.f32 %v403_v7, 0.0 }
 0x102   :  { %v342_v17 = vadd.f32 %v2221_v49, %v341_v15  ;;  %v418_v31 = vmax.f32 %v402_v10, 0.0 }
 0x103   :  { %v405_v19 = vadd.f32 %v347_v14, %v2250_v11  ;;  %v1507_v20 = vpop.f32.mrb[6].mxu0  ;;  %v441_v34 = vmul.f32 %v2239_v0, %v419_v18 }
 0x104   :  { %v2260_v22 = vadd.f32 %v1507_v20, %v2216_v48  ;;  %v1563_v23 = vpop.f32.mrb[6].mxu1  ;;  %v165_v24 = vpop.f32.mrb[7].mxu0  ;;  %v404_v25 = vadd.f32 %v342_v17, %v2254_v16  ;;  %v440_v50 = vmul.f32 %v2239_v0, %v418_v31 }
 0x105   :  { %v357_v26 = vadd.f32 %v1563_v23, %v2221_v49  ;;  %v2265_v27 = vadd.f32 %v2216_v48, %v165_v24  ;;  %v351_v28 = vpop.f32.mrb[7].mxu1  ;;  %454 = vadd.xlane.f32.xlu0 %v438_v21  ;;  %v421_v45 = vmax.f32 %v405_v19, 0.0 }
 0x106   :  { %v352_v29 = vadd.f32 %v2221_v49, %v351_v28  ;;  %v420_v30 = vmax.f32 %v404_v25, 0.0 }
 0x107   :  { %v407_v32 = vadd.f32 %v357_v26, %v2260_v22  ;;  %v1510_v33 = vpop.f32.mrb[8].mxu0  ;;  %v443_v5 = vmul.f32 %v2239_v0, %v421_v45 }
 0x108   :  { %v406_v35 = vadd.f32 %v352_v29, %v2265_v27  ;;  %v2272_v36 = vadd.f32 %v1510_v33, %v2216_v48  ;;  %v1566_v37 = vpop.f32.mrb[8].mxu1  ;;  %v175_v38 = vpop.f32.mrb[9].mxu0  ;;  %v442_v39 = vmul.f32 %v2239_v0, %v420_v30 }
 0x109   :  { %v367_v40 = vadd.f32 %v1566_v37, %v2221_v49  ;;  %v2277_v41 = vadd.f32 %v2216_v48, %v175_v38  ;;  %v361_v42 = vpop.f32.mrb[9].mxu1  ;;  %460 = vadd.xlane.f32.xlu0 %v441_v34  ;;  %v423_v1 = vmax.f32 %v407_v32, 0.0 }
 0x10a   :  { %v422_v43 = vmax.f32 %v406_v35, 0.0  ;;  %v362_v44 = vadd.f32 %v2221_v49, %v361_v42  ;;  %462 = vadd.xlane.f32.xlu1 %v442_v39 }
 0x10b   :  { %v409_v46 = vadd.f32 %v367_v40, %v2272_v36  ;;  %v1513_v47 = vpop.f32.mrb[10].mxu0  ;;  %v445_v21 = vmul.f32 %v2239_v0, %v423_v1 }
 0x10c   :  { %v408_v52 = vadd.f32 %v362_v44, %v2277_v41  ;;  %v2284_v53 = vadd.f32 %v1513_v47, %v2216_v48  ;;  %v1569_v54 = vpop.f32.mrb[10].mxu1  ;;  %v185_v56 = vpop.f32.mrb[11].mxu0  ;;  %v444_v57 = vmul.f32 %v2239_v0, %v422_v43 }
 0x10d   :  { %v377_v58 = vadd.f32 %v1569_v54, %v2221_v49  ;;  %v2289_v59 = vadd.f32 %v2216_v48, %v185_v56  ;;  %v371_v60 = vpop.f32.mrb[11].mxu1  ;;  %458 = vadd.xlane.f32.xlu0 %v440_v50  ;;  %v425_v18 = vmax.f32 %v409_v46, 0.0 }
 0x10e   :  { %v424_v62 = vmax.f32 %v408_v52, 0.0  ;;  %v372_v63 = vadd.f32 %v2221_v49, %v371_v60  ;;  %466 = vadd.xlane.f32.xlu1 %v444_v57 }
 0x10f   :  { %v411_v3 = vadd.f32 %v377_v58, %v2284_v53  ;;  %v1516_v4 = vpop.f32.mrb[12].mxu0  ;;  %v447_v38 = vmul.f32 %v2239_v0, %v425_v18 }
 0x110   :  { %v410_v6 = vadd.f32 %v372_v63, %v2289_v59  ;;  %v2296_v7 = vadd.f32 %v1516_v4, %v2216_v48  ;;  %v1572_v8 = vpop.f32.mrb[12].mxu1  ;;  %v195_v9 = vpop.f32.mrb[13].mxu0  ;;  %v446_v10 = vmul.f32 %v2239_v0, %v424_v62 }
 0x111   :  { %v387_v12 = vadd.f32 %v1572_v8, %v2221_v49  ;;  %v2301_v13 = vadd.f32 %v2216_v48, %v195_v9  ;;  %v381_v14 = vpop.f32.mrb[13].mxu1  ;;  %464 = vadd.xlane.f32.xlu0 %v443_v5  ;;  %v427_v32 = vmax.f32 %v411_v3, 0.0 }
 0x112   :  { %v426_v15 = vmax.f32 %v410_v6, 0.0  ;;  %v382_v17 = vadd.f32 %v2221_v49, %v381_v14  ;;  %470 = vadd.xlane.f32.xlu1 %v446_v10 }
 0x113   :  { %v413_v19 = vadd.f32 %v387_v12, %v2296_v7  ;;  %v1519_v20 = vpop.f32.mrb[14].mxu0  ;;  %v449_v54 = vmul.f32 %v2239_v0, %v427_v32 }
 0x114   :  { %v412_v23 = vadd.f32 %v382_v17, %v2301_v13  ;;  %v2308_v24 = vadd.f32 %v1519_v20, %v2216_v48  ;;  %v1575_v25 = vpop.f32.mrb[14].mxu1  ;;  %v205_v26 = vpop.f32.mrb[15].mxu0  ;;  %v448_v28 = vmul.f32 %v2239_v0, %v426_v15 }
 0x115   :  { %v397_v29 = vadd.f32 %v1575_v25, %v2221_v49  ;;  %v2313_v30 = vadd.f32 %v2216_v48, %v205_v26  ;;  %v391_v31 = vpop.f32.mrb[15].mxu1  ;;  %468 = vadd.xlane.f32.xlu0 %v445_v21  ;;  %v429_v56 = vmax.f32 %v413_v19, 0.0 }
 0x116   :  { %v428_v33 = vmax.f32 %v412_v23, 0.0  ;;  %v392_v34 = vadd.f32 %v2221_v49, %v391_v31  ;;  %474 = vadd.xlane.f32.xlu1 %v448_v28 }
 0x117   :  { %v415_v35 = vadd.f32 %v397_v29, %v2308_v24  ;;  %v1610_v37 = vpop.f32.mrb[16].mxu0  ;;  %v451_v21 = vmul.f32 %v2239_v0, %v429_v56 }
 0x118   :  { %v414_v39 = vadd.f32 %v392_v34, %v2313_v30  ;;  %v575_v40 = vadd.f32 %v1610_v37, %v2221_v49  ;;  %v1666_v42 = vpop.f32.mrb[16].mxu1  ;;  %v569_v43 = vpop.f32.mrb[17].mxu0  ;;  %v450_v48 = vmul.f32 %v2239_v0, %v428_v33 }
 0x119   :  { %v817_v44 = vadd.f32 %v1666_v42, %v2221_v49  ;;  %v570_v45 = vadd.f32 %v2221_v49, %v569_v43  ;;  %v811_v46 = vpop.f32.mrb[17].mxu1  ;;  %472 = vadd.xlane.f32.xlu0 %v447_v38  ;;  %v431_v57 = vmax.f32 %v415_v35, 0.0 }
 0x11a   :  { %v430_v47 = vmax.f32 %v414_v39, 0.0  ;;  %v649_v50 = vadd.f32 %v575_v40, %v2224_v51  ;;  %v812_v52 = vadd.f32 %v2221_v49, %v811_v46  ;;  %478 = vadd.xlane.f32.xlu1 %v450_v48 }
 0x11b   :  { %v891_v58 = vadd.f32 %v817_v44, %v2224_v51  ;;  %v648_v60 = vadd.f32 %v570_v45, %v2228_v55  ;;  %v1613_v62 = vpop.f32.mrb[18].mxu0  ;;  %v453_v31 = vmul.f32 %v2239_v0, %v431_v57 }
 0x11c   :  { %v665_v63 = vmax.f32 %v649_v50, 0.0  ;;  %v890_v1 = vadd.f32 %v812_v52, %v2228_v55  ;;  %v585_v3 = vadd.f32 %v1613_v62, %v2221_v49  ;;  %v1669_v4 = vpop.f32.mrb[18].mxu1  ;;  %v579_v5 = vpop.f32.mrb[19].mxu0  ;;  %v452_v6 = vmul.f32 %v2239_v0, %v430_v47 }
 0x11d   :  { %v907_v8 = vmax.f32 %v891_v58, 0.0  ;;  %v827_v9 = vadd.f32 %v1669_v4, %v2221_v49  ;;  %v580_v10 = vadd.f32 %v2221_v49, %v579_v5  ;;  %v821_v12 = vpop.f32.mrb[19].mxu1  ;;  %476 = vadd.xlane.f32.xlu0 %v449_v54  ;;  %v664_v51 = vmax.f32 %v648_v60, 0.0 }
 0x11e   :  { %v651_v14 = vadd.f32 %v585_v3, %v2234_v61  ;;  %v822_v15 = vadd.f32 %v2221_v49, %v821_v12  ;;  %482 = vadd.xlane.f32.xlu1 %v452_v6  ;;  %v681_v55 = vmul.f32 %v2239_v0, %v665_v63  ;;  %v906_v17 = vmax.f32 %v890_v1, 0.0 }
 0x11f   :  { %v893_v18 = vadd.f32 %v827_v9, %v2234_v61  ;;  %v650_v19 = vadd.f32 %v580_v10, %v2243_v2  ;;  %v1616_v20 = vpop.f32.mrb[20].mxu0  ;;  %v680_v39 = vmul.f32 %v2239_v0, %v664_v51 }
 0x120   :  { %v667_v23 = vmax.f32 %v651_v14, 0.0  ;;  %v892_v25 = vadd.f32 %v822_v15, %v2243_v2  ;;  %v595_v26 = vadd.f32 %v1616_v20, %v2221_v49  ;;  %v1672_v28 = vpop.f32.mrb[20].mxu1  ;;  %v589_v29 = vpop.f32.mrb[21].mxu0  ;;  %v923_v2 = vmul.f32 %v2239_v0, %v907_v8 }
 0x121   :  { %v909_v32 = vmax.f32 %v893_v18, 0.0  ;;  %v666_v33 = vmax.f32 %v650_v19, 0.0  ;;  %v837_v34 = vadd.f32 %v1672_v28, %v2221_v49  ;;  %v590_v61 = vadd.f32 %v2221_v49, %v589_v29  ;;  %v831_v35 = vpop.f32.mrb[21].mxu1  ;;  %480 = vadd.xlane.f32.xlu0 %v451_v21 }
 0x122   :  { %v2345_v37 = vadd.f32 %v595_v26, %v2250_v11  ;;  %v832_v38 = vadd.f32 %v2221_v49, %v831_v35  ;;  %698 = vadd.xlane.f32.xlu1 %v681_v55  ;;  %v908_v40 = vmax.f32 %v892_v25, 0.0  ;;  %v922_v44 = vmul.f32 %v2239_v0, %v906_v17 }
 0x123   :  { %v2351_v42 = vadd.f32 %v837_v34, %v2250_v11  ;;  %v652_v43 = vadd.f32 %v590_v61, %v2254_v16  ;;  %v1619_v48 = vpop.f32.mrb[22].mxu0  ;;  %v683_v52 = vmul.f32 %v2239_v0, %v667_v23  ;;  %v2359_v54 = vmul.f32 %v2239_v0, %v909_v32 }
 0x124   :  { %v894_v45 = vadd.f32 %v832_v38, %v2254_v16  ;;  %v605_v46 = vadd.f32 %v1619_v48, %v2221_v49  ;;  %v1675_v47 = vpop.f32.mrb[22].mxu1  ;;  %v599_v50 = vpop.f32.mrb[23].mxu0  ;;  %v2364_v60 = vmul.f32 %v2239_v0, %v666_v33  ;;  %v669_v16 = vmax.f32 %v2345_v37, 0.0 }
 0x125   :  { %v668_v56 = vmax.f32 %v652_v43, 0.0  ;;  %v847_v11 = vadd.f32 %v1675_v47, %v2221_v49  ;;  %v600_v57 = vadd.f32 %v2221_v49, %v599_v50  ;;  %v841_v58 = vpop.f32.mrb[23].mxu1  ;;  %484 = vadd.xlane.f32.xlu0 %v453_v31  ;;  %v911_v3 = vmax.f32 %v2351_v42, 0.0 }
 0x126   :  { %v910_v62 = vmax.f32 %v894_v45, 0.0  ;;  %v655_v63 = vadd.f32 %v605_v46, %v2260_v22  ;;  %v842_v1 = vadd.f32 %v2221_v49, %v841_v58  ;;  %940 = vadd.xlane.f32.xlu1 %v923_v2  ;;  %v924_v8 = vmul.f32 %v2239_v0, %v908_v40 }
 0x127   :  { %v897_v4 = vadd.f32 %v847_v11, %v2260_v22  ;;  %v654_v5 = vadd.f32 %v600_v57, %v2265_v27  ;;  %v1622_v6 = vpop.f32.mrb[24].mxu0  ;;  %v684_v15 = vmul.f32 %v2239_v0, %v668_v56 }
 0x128   :  { %v671_v9 = vmax.f32 %v655_v63, 0.0  ;;  %v2374_v10 = vadd.f32 %v842_v1, %v2265_v27  ;;  %v615_v12 = vadd.f32 %v1622_v6, %v2221_v49  ;;  %v1678_v51 = vpop.f32.mrb[24].mxu1  ;;  %v609_v14 = vpop.f32.mrb[25].mxu0  ;;  %v926_v27 = vmul.f32 %v2239_v0, %v910_v62 }
 0x129   :  { %v913_v55 = vmax.f32 %v897_v4, 0.0  ;;  %v670_v17 = vmax.f32 %v654_v5, 0.0  ;;  %v857_v18 = vadd.f32 %v1678_v51, %v2221_v49  ;;  %v610_v22 = vadd.f32 %v2221_v49, %v609_v14  ;;  %v851_v19 = vpop.f32.mrb[25].mxu1  ;;  %938 = vadd.xlane.f32.xlu0 %v922_v44 }
 0x12a   :  { %v657_v20 = vadd.f32 %v615_v12, %v2272_v36  ;;  %v852_v21 = vadd.f32 %v2221_v49, %v851_v19  ;;  %696 = vadd.xlane.f32.xlu1 %v680_v39  ;;  %v2384_v23 = vmul.f32 %v2239_v0, %v671_v9  ;;  %v912_v25 = vmax.f32 %v2374_v10, 0.0 }
 0x12b   :  { %v899_v26 = vadd.f32 %v857_v18, %v2272_v36  ;;  %v656_v28 = vadd.f32 %v610_v22, %v2277_v41  ;;  %v1625_v29 = vpop.f32.mrb[26].mxu0  ;;  %v2390_v31 = vmul.f32 %v2239_v0, %v913_v55  ;;  %v2395_v38 = vmul.f32 %v2239_v0, %v670_v17 }
 0x12c   :  { %v673_v32 = vmax.f32 %v657_v20, 0.0  ;;  %v898_v33 = vadd.f32 %v852_v21, %v2277_v41  ;;  %v625_v34 = vadd.f32 %v1625_v29, %v2221_v49  ;;  %v1681_v61 = vpop.f32.mrb[26].mxu1  ;;  %v619_v35 = vpop.f32.mrb[27].mxu0 }
 0x12d   :  { %v915_v2 = vmax.f32 %v899_v26, 0.0  ;;  %v672_v39 = vmax.f32 %v656_v28, 0.0  ;;  %v867_v36 = vadd.f32 %v1681_v61, %v2221_v49  ;;  %v620_v40 = vadd.f32 %v2221_v49, %v619_v35  ;;  %v861_v43 = vpop.f32.mrb[27].mxu1  ;;  %942 = vadd.xlane.f32.xlu0 %v924_v8 }
 0x12e   :  { %v914_v48 = vmax.f32 %v898_v33, 0.0  ;;  %v659_v44 = vadd.f32 %v625_v34, %v2284_v53  ;;  %v862_v41 = vadd.f32 %v2221_v49, %v861_v43  ;;  %702 = vadd.xlane.f32.xlu1 %v683_v52  ;;  %v2402_v45 = vmul.f32 %v2239_v0, %v673_v32 }
 0x12f   :  { %v901_v46 = vadd.f32 %v867_v36, %v2284_v53  ;;  %v658_v47 = vadd.f32 %v620_v40, %v2289_v59  ;;  %v1628_v50 = vpop.f32.mrb[28].mxu0  ;;  %v688_v56 = vmul.f32 %v2239_v0, %v672_v39  ;;  %v2408_v11 = vmul.f32 %v2239_v0, %v915_v2 }
 0x130   :  { %v675_v57 = vmax.f32 %v659_v44, 0.0  ;;  %v900_v58 = vadd.f32 %v862_v41, %v2289_v59  ;;  %v635_v62 = vadd.f32 %v1628_v50, %v2221_v49  ;;  %v1684_v63 = vpop.f32.mrb[28].mxu1  ;;  %v629_v52 = vpop.f32.mrb[29].mxu0  ;;  %v930_v1 = vmul.f32 %v2239_v0, %v914_v48 }
 0x131   :  { %v917_v4 = vmax.f32 %v901_v46, 0.0  ;;  %v674_v5 = vmax.f32 %v658_v47, 0.0  ;;  %v877_v53 = vadd.f32 %v1684_v63, %v2221_v49  ;;  %v630_v6 = vadd.f32 %v2221_v49, %v629_v52  ;;  %v871_v8 = vpop.f32.mrb[29].mxu1  ;;  %704 = vadd.xlane.f32.xlu0 %v684_v15 }
 0x132   :  { %v916_v9 = vmax.f32 %v900_v58, 0.0  ;;  %v661_v12 = vadd.f32 %v635_v62, %v2296_v7  ;;  %v872_v51 = vadd.f32 %v2221_v49, %v871_v8  ;;  %944 = vadd.xlane.f32.xlu1 %v2359_v54  ;;  %v691_v59 = vmul.f32 %v2239_v0, %v675_v57 }
 0x133   :  { %v903_v14 = vadd.f32 %v877_v53, %v2296_v7  ;;  %v660_v55 = vadd.f32 %v630_v6, %v2301_v13  ;;  %v1631_v17 = vpop.f32.mrb[30].mxu0  ;;  %v690_v18 = vmul.f32 %v2239_v0, %v674_v5  ;;  %v933_v22 = vmul.f32 %v2239_v0, %v917_v4 }
 0x134   :  { %v677_v19 = vmax.f32 %v661_v12, 0.0  ;;  %v902_v15 = vadd.f32 %v872_v51, %v2301_v13  ;;  %v645_v20 = vadd.f32 %v1631_v17, %v2221_v49  ;;  %v1687_v21 = vpop.f32.mrb[30].mxu1  ;;  %v639_v26 = vpop.f32.mrb[31].mxu0  ;;  %v932_v54 = vmul.f32 %v2239_v0, %v916_v9 }
 0x135   :  { %v919_v28 = vmax.f32 %v903_v14, 0.0  ;;  %v676_v29 = vmax.f32 %v660_v55, 0.0  ;;  %v887_v7 = vadd.f32 %v1687_v21, %v2221_v49  ;;  %v640_v32 = vadd.f32 %v2221_v49, %v639_v26  ;;  %v881_v33 = vpop.f32.mrb[31].mxu1  ;;  %946 = vadd.xlane.f32.xlu0 %v926_v27 }
 0x136   :  { %v918_v34 = vmax.f32 %v902_v15, 0.0  ;;  %v663_v61 = vadd.f32 %v645_v20, %v2308_v24  ;;  %v882_v35 = vadd.f32 %v2221_v49, %v881_v33  ;;  %700 = vadd.xlane.f32.xlu1 %v2364_v60  ;;  %v693_v13 = vmul.f32 %v2239_v0, %v677_v19 }
 0x137   :  { %v905_v2 = vadd.f32 %v887_v7, %v2308_v24  ;;  %v662_v39 = vadd.f32 %v640_v32, %v2313_v30  ;;  %v692_v36 = vmul.f32 %v2239_v0, %v676_v29  ;;  %v935_v40 = vmul.f32 %v2239_v0, %v919_v28 }
 0x138   :  { %v679_v43 = vmax.f32 %v663_v61, 0.0  ;;  %v904_v27 = vadd.f32 %v882_v35, %v2313_v30  ;;  %v685_v48 = vmul.f32 %v2239_v0, %v669_v16  ;;  %v934_v49 = vmul.f32 %v2239_v0, %v918_v34 }
 0x139   :  { %v921_v60 = vmax.f32 %v905_v2, 0.0  ;;  %v678_v44 = vmax.f32 %v662_v39, 0.0  ;;  %708 = vadd.xlane.f32.xlu0 %v2395_v38  ;;  %v928_v46 = vmul.f32 %v2239_v0, %v912_v25  ;;  %v927_v16 = vmul.f32 %v2239_v0, %v911_v3 }
 0x13a   :  { %v920_v24 = vmax.f32 %v904_v27, 0.0  ;;  %706 = vadd.xlane.f32.xlu1 %v685_v48  ;;  %v695_v41 = vmul.f32 %v2239_v0, %v679_v43 }
 0x13b   :  { %v694_v30 = vmul.f32 %v2239_v0, %v678_v44  ;;  %v937_v37 = vmul.f32 %v2239_v0, %v921_v60 }
 0x13c   :  { %v936_v47 = vmul.f32 %v2239_v0, %v920_v24  ;;  %v986_v0 = vlaneseq }
 0x13d   :  { %950 = vadd.xlane.f32.xlu0 %v928_v46 }
 0x13e   :  { %948 = vadd.xlane.f32.xlu1 %v927_v16  ;;  %v2456_v42 = vand.u32 127, %v986_v0  ;;  %v2458_v3 = vshrl.u32 %v986_v0, 7 }
 0x140   :  { %v992_v10 = vadd.s32 4294967288, %v2456_v42  ;;  %v1013_v58 = vadd.s32 4294967264, %v2456_v42  ;;  %v1027_v5 = vadd.s32 4294967248, %v2456_v42  ;;  %v1034_v51 = vadd.s32 4294967240, %v2456_v42 }
 0x141   :  { %712 = vadd.xlane.f32.xlu0 %v688_v56  ;;  %v999_v56 = vadd.s32 4294967280, %v2456_v42  ;;  %v1041_v55 = vadd.s32 4294967232, %v2456_v42  ;;  %v1055_v7 = vadd.s32 4294967216, %v2456_v42  ;;  %v1062_v2 = vadd.s32 4294967208, %v2456_v42 }
 0x142   :  { %710 = vadd.xlane.f32.xlu1 %v2384_v23  ;;  %v2462_v25 = vsub.s32 %v992_v10, %v2458_v3  ;;  %v2483_v53 = vsub.s32 %v1013_v58, %v2458_v3  ;;  %v2492_v14 = vsub.s32 %v1027_v5, %v2458_v3  ;;  %v2501_v26 = vsub.s32 %v1034_v51, %v2458_v3 }
 0x143   :  { %v2475_v52 = vsub.s32 %v999_v56, %v2458_v3  ;;  %v2506_v29 = vsub.s32 %v1041_v55, %v2458_v3  ;;  %v2525_v44 = vsub.s32 %v1062_v2, %v2458_v3  ;;  %v1076_v24 = vadd.s32 4294967192, %v2456_v42 }
 0x145   :  { %954 = vadd.xlane.f32.xlu0 %v930_v1  ;;  %v1020_v1 = vadd.s32 4294967256, %v2456_v42 }
 0x146   :  { %952 = vadd.xlane.f32.xlu1 %v2390_v31  ;;  %v2466_v31 = vsub.s32 %v2456_v42, %v2458_v3 }
 0x147   :  { %v2487_v12 = vsub.s32 %v1020_v1, %v2458_v3 }
 0x149   :  { %716 = vadd.xlane.f32.xlu0 %v690_v18 }
 0x14a   :  { %714 = vadd.xlane.f32.xlu1 %v2402_v45 }
 0x14d   :  { %958 = vadd.xlane.f32.xlu0 %v932_v54  ;;  %v1048_v54 = vadd.s32 4294967224, %v2456_v42 }
 0x14e   :  { %956 = vadd.xlane.f32.xlu1 %v2408_v11  ;;  %v1006_v11 = vadd.s32 4294967272, %v2456_v42 }
 0x150   :  { %v2479_v4 = vsub.s32 %v1006_v11, %v2458_v3 }
 0x151   :  { %720 = vadd.xlane.f32.xlu0 %v692_v36  ;;  %v2518_v36 = vsub.s32 %v1055_v7, %v2458_v3 }
 0x152   :  { %718 = vadd.xlane.f32.xlu1 %v691_v59 }
 0x155   :  { %962 = vadd.xlane.f32.xlu0 %v934_v49 }
 0x156   :  { %960 = vadd.xlane.f32.xlu1 %v933_v22 }
 0x159   :  { %724 = vadd.xlane.f32.xlu0 %v694_v30  ;;  %v1083_v30 = vadd.s32 4294967184, %v2456_v42 }
 0x15a   :  { %722 = vadd.xlane.f32.xlu1 %v693_v13  ;;  %v2513_v13 = vsub.s32 %v1048_v54, %v2458_v3 }
 0x15d   :  { %966 = vadd.xlane.f32.xlu0 %v936_v47 }
 0x15e   :  { %964 = vadd.xlane.f32.xlu1 %v935_v40  ;;  %v1069_v40 = vadd.s32 4294967200, %v2456_v42 }
 0x160   :  { %v2530_v46 = vsub.s32 %v1069_v40, %v2458_v3 }
 0x162   :  { %726 = vadd.xlane.f32.xlu1 %v695_v41 }
 0x166   :  { %968 = vadd.xlane.f32.xlu1 %v937_v37 }
 0x18e   :  { %v457_v23 = vpop.xlane.xlu0 %456 }
 0x18f   :  { %v996_v45 = vrot.slane %v457_v23, %v2462_v25  ;;  %v2537_v23 = vsub.s32 %v1076_v24, %v2458_v3 }
 0x192   :  { %v455_v38 = vpop.xlane.xlu0 %454 }
 0x193   :  { %v991_v50 = vrot.slane %v455_v38, %v2466_v31 }
 0x195   :  { %v998_v57 = vsel %vm997_vm0, %v996_v45, %v991_v50  ;;  %v2541_v45 = vsub.s32 %v1083_v30, %v2458_v3 }
 0x196   :  { %v461_v62 = vpop.xlane.xlu0 %460 }
 0x197   :  { %v463_v63 = vpop.xlane.xlu1 %462  ;;  %v1010_v59 = vrot.slane %v461_v62, %v2479_v4 }
 0x198   :  { %v1017_v17 = vrot.slane %v463_v63, %v2483_v53 }
 0x19a   :  { %v459_v6 = vpop.xlane.xlu0 %458 }
 0x19b   :  { %v1003_v8 = vrot.slane %v459_v6, %v2475_v52  ;;  %v467_v9 = vpop.xlane.xlu1 %466 }
 0x19c   :  { %v1031_v28 = vrot.slane %v467_v9, %v2492_v14 }
 0x19d   :  { %v1005_v18 = vsel %vm1004_vm1, %v1003_v8, %v998_v57 }
 0x19e   :  { %v1012_v22 = vsel %vm1011_vm2, %v1010_v59, %v1005_v18  ;;  %v465_v19 = vpop.xlane.xlu0 %464 }
 0x19f   :  { %v1019_v15 = vsel %vm1018_vm3, %v1017_v17, %v1012_v22  ;;  %v1024_v20 = vrot.slane %v465_v19, %v2487_v12  ;;  %v471_v21 = vpop.xlane.xlu1 %470 }
 0x1a0   :  { %v1045_v39 = vrot.slane %v471_v21, %v2506_v29 }
 0x1a1   :  { %v1026_v32 = vsel %vm1025_vm4, %v1024_v20, %v1019_v15 }
 0x1a2   :  { %v1033_v33 = vsel %vm1032_vm5, %v1031_v28, %v1026_v32  ;;  %v469_v34 = vpop.xlane.xlu0 %468 }
 0x1a3   :  { %v1038_v61 = vrot.slane %v469_v34, %v2501_v26  ;;  %v475_v35 = vpop.xlane.xlu1 %474 }
 0x1a4   :  { %v1059_v41 = vrot.slane %v475_v35, %v2518_v36 }
 0x1a5   :  { %v1040_v43 = vsel %vm1039_vm6, %v1038_v61, %v1033_v33 }
 0x1a6   :  { %v1047_v27 = vsel %vm1046_vm7, %v1045_v39, %v1040_v43  ;;  %v473_v48 = vpop.xlane.xlu0 %472 }
 0x1a7   :  { %v1052_v49 = vrot.slane %v473_v48, %v2513_v13  ;;  %v479_v60 = vpop.xlane.xlu1 %478 }
 0x1a8   :  { %v1073_v38 = vrot.slane %v479_v60, %v2530_v46 }
 0x1a9   :  { %v1054_v37 = vsel %vm1053_vm8, %v1052_v49, %v1047_v27 }
 0x1aa   :  { %v1061_v16 = vsel %vm1060_vm9, %v1059_v41, %v1054_v37  ;;  %v477_v47 = vpop.xlane.xlu0 %476 }
 0x1ab   :  { %v1066_v0 = vrot.slane %v477_v47, %v2525_v44  ;;  %v483_v10 = vpop.xlane.xlu1 %482 }
 0x1ac   :  { %v1087_v62 = vrot.slane %v483_v10, %v2541_v45 }
 0x1ad   :  { %v1068_v50 = vsel %vm1067_vm10, %v1066_v0, %v1061_v16 }
 0x1ae   :  { %v1075_v56 = vsel %vm1074_vm11, %v1073_v38, %v1068_v50  ;;  %v481_v11 = vpop.xlane.xlu0 %480 }
 0x1af   :  { %v1080_v57 = vrot.slane %v481_v11, %v2537_v23  ;;  %v699_v58 = vpop.xlane.xlu1 %698 }
 0x1b0   :  { %v1121_v34 = vrot.slane %v699_v58, %v2462_v25 }
 0x1b1   :  { %v1082_v63 = vsel %vm1081_vm12, %v1080_v57, %v1075_v56 }
 0x1b2   :  { %v2549_v1 = vsel %vm1088_vm13, %v1087_v62, %v1082_v63  ;;  %v2551_v5 = vpop.xlane.xlu0 %484 }
 0x1b3   :  { %v941_v6 = vpop.xlane.xlu1 %940 }
 0x1b4   :  { %v1217_v37 = vrot.slane %v941_v6, %v2462_v25 }
 0x1b6   :  { %v939_v8 = vpop.xlane.xlu0 %938 }
 0x1b7   :  { %v697_v9 = vpop.xlane.xlu1 %696  ;;  %v1213_v48 = vrot.slane %v939_v8, %v2466_v31 }
 0x1b8   :  { %v1117_v7 = vrot.slane %v697_v9, %v2466_v31 }
 0x1b9   :  { %v1218_v10 = vsel %vm997_vm0, %v1217_v37, %v1213_v48 }
 0x1ba   :  { %v943_v51 = vpop.xlane.xlu0 %942  ;;  %v1122_v35 = vsel %vm997_vm0, %v1121_v34, %v1117_v7  ;;  %vm1292_vm0 = vcmask 1041408  }
 0x1bb   :  { %v703_v59 = vpop.xlane.xlu1 %702  ;;  %v1222_v24 = vrot.slane %v943_v51, %v2475_v52 }
 0x1bc   :  { %v1131_v40 = vrot.slane %v703_v59, %v2479_v4 }
 0x1bd   :  { %v1223_v50 = vsel %vm1004_vm1, %v1222_v24, %v1218_v10 }
 0x1be   :  { %v705_v55 = vpop.xlane.xlu0 %704 }
 0x1bf   :  { %v945_v17 = vpop.xlane.xlu1 %944  ;;  %v1136_v49 = vrot.slane %v705_v55, %v2483_v53 }
 0x1c0   :  { %v1227_v16 = vrot.slane %v945_v17, %v2479_v4 }
 0x1c2   :  { %v947_v18 = vpop.xlane.xlu0 %946  ;;  %v1228_v25 = vsel %vm1011_vm2, %v1227_v16, %v1223_v50 }
 0x1c3   :  { %v701_v22 = vpop.xlane.xlu1 %700  ;;  %v1232_v0 = vrot.slane %v947_v18, %v2483_v53 }
 0x1c4   :  { %v1126_v32 = vrot.slane %v701_v22, %v2475_v52 }
 0x1c5   :  { %v1233_v57 = vsel %vm1018_vm3, %v1232_v0, %v1228_v25 }
 0x1c6   :  { %v709_v19 = vpop.xlane.xlu0 %708  ;;  %v1127_v2 = vsel %vm1004_vm1, %v1126_v32, %v1122_v35 }
 0x1c7   :  { %v707_v15 = vpop.xlane.xlu1 %706  ;;  %v1132_v27 = vsel %vm1011_vm2, %v1131_v40, %v1127_v2  ;;  %v1146_v4 = vrot.slane %v709_v19, %v2492_v14 }
 0x1c8   :  { %v1141_v41 = vrot.slane %v707_v15, %v2487_v12  ;;  %v1137_v47 = vsel %vm1018_vm3, %v1136_v49, %v1132_v27 }
 0x1ca   :  { %v951_v20 = vpop.xlane.xlu0 %950  ;;  %v1142_v52 = vsel %vm1025_vm4, %v1141_v41, %v1137_v47 }
 0x1cb   :  { %v949_v21 = vpop.xlane.xlu1 %948  ;;  %v1147_v58 = vsel %vm1032_vm5, %v1146_v4, %v1142_v52  ;;  %v1242_v62 = vrot.slane %v951_v20, %v2492_v14  ;;  %v1090_v20 = vadd.s32 4294967176, %v2456_v42 }
 0x1cc   :  { %v1237_v31 = vrot.slane %v949_v21, %v2487_v12 }
 0x1cd   :  { %v1093_v42 = vsub.s32 %v1090_v20, %v2458_v3 }
 0x1ce   :  { %v713_v54 = vpop.xlane.xlu0 %712  ;;  %v1238_v53 = vsel %vm1025_vm4, %v1237_v31, %v1233_v57 }
 0x1cf   :  { %v711_v28 = vpop.xlane.xlu1 %710  ;;  %v1156_v9 = vrot.slane %v713_v54, %v2506_v29  ;;  %v1243_v59 = vsel %vm1032_vm5, %v1242_v62, %v1238_v53 }
 0x1d0   :  { %v1151_v56 = vrot.slane %v711_v28, %v2501_v26 }
 0x1d2   :  { %v955_v33 = vpop.xlane.xlu0 %954  ;;  %v1152_v63 = vsel %vm1039_vm6, %v1151_v56, %v1147_v58 }
 0x1d3   :  { %v953_v61 = vpop.xlane.xlu1 %952  ;;  %v1157_v17 = vsel %vm1046_vm7, %v1156_v9, %v1152_v63 }
 0x1d4   :  { %v1247_v12 = vrot.slane %v953_v61, %v2501_v26  ;;  %v1252_v26 = vrot.slane %v955_v33, %v2506_v29 }
 0x1d6   :  { %v717_v39 = vpop.xlane.xlu0 %716  ;;  %v1248_v55 = vsel %vm1039_vm6, %v1247_v12, %v1243_v59 }
 0x1d7   :  { %v715_v43 = vpop.xlane.xlu1 %714  ;;  %v1166_v15 = vrot.slane %v717_v39, %v2518_v36  ;;  %v1253_v21 = vsel %vm1046_vm7, %v1252_v26, %v1248_v55 }
 0x1d8   :  { %v1161_v6 = vrot.slane %v715_v43, %v2513_v13 }
 0x1da   :  { %v959_v60 = vpop.xlane.xlu0 %958  ;;  %v1162_v14 = vsel %vm1053_vm8, %v1161_v6, %v1157_v17 }
 0x1db   :  { %v957_v30 = vpop.xlane.xlu1 %956  ;;  %v1167_v28 = vsel %vm1060_vm9, %v1166_v15, %v1162_v14  ;;  %v1262_v29 = vrot.slane %v959_v60, %v2518_v36  ;;  %v1094_v60 = vrot.slane %v2551_v5, %v1093_v42  ;;  %v1294_v5 = vstv %s2628_s7 }
 0x1dc   :  { %v1257_v18 = vrot.slane %v957_v30, %v2513_v13 }
 0x1dd   :  { %v1096_v16 = vsel %vm1095_vm14, %v1094_v60, %v2549_v1 }
 0x1de   :  { %v721_v38 = vpop.xlane.xlu0 %720  ;;  %v1258_v54 = vsel %vm1053_vm8, %v1257_v18, %v1253_v21 }
 0x1df   :  { %v719_v11 = vpop.xlane.xlu1 %718  ;;  %v1176_v61 = vrot.slane %v721_v38, %v2530_v46  ;;  %v1263_v35 = vsel %vm1060_vm9, %v1262_v29, %v1258_v54 }
 0x1e0   :  { %v1171_v22 = vrot.slane %v719_v11, %v2525_v44 }
 0x1e2   :  { %v963_v51 = vpop.xlane.xlu0 %962  ;;  %v1172_v32 = vsel %vm1067_vm10, %v1171_v22, %v1167_v28 }
 0x1e3   :  { %v961_v8 = vpop.xlane.xlu1 %960  ;;  %v1177_v39 = vsel %vm1074_vm11, %v1176_v61, %v1172_v32  ;;  %v1272_v40 = vrot.slane %v963_v51, %v2530_v46 }
 0x1e4   :  { %v1267_v7 = vrot.slane %v961_v8, %v2525_v44 }
 0x1e6   :  { %v725_v13 = vpop.xlane.xlu0 %724  ;;  %v1268_v2 = vsel %vm1067_vm10, %v1267_v7, %v1263_v35 }
 0x1e7   :  { %v723_v19 = vpop.xlane.xlu1 %722  ;;  %v1186_v27 = vrot.slane %v725_v13, %v2541_v45  ;;  %v1273_v3 = vsel %vm1074_vm11, %v1272_v40, %v1268_v2 }
 0x1e8   :  { %v1181_v33 = vrot.slane %v723_v19, %v2537_v23 }
 0x1ea   :  { %v1182_v36 = vsel %vm1081_vm12, %v1181_v33, %v1177_v39  ;;  %v967_v48 = vpop.xlane.xlu0 %966 }
 0x1eb   :  { %v965_v34 = vpop.xlane.xlu1 %964  ;;  %v1187_v41 = vsel %vm1088_vm13, %v1186_v27, %v1182_v36 }
 0x1ec   :  { %v1277_v44 = vrot.slane %v965_v34, %v2537_v23  ;;  %v1282_v23 = vrot.slane %v967_v48, %v2541_v45 }
 0x1ee   :  { %v1278_v24 = vsel %vm1081_vm12, %v1277_v44, %v1273_v3 }
 0x1ef   :  { %v727_v43 = vpop.xlane.xlu1 %726  ;;  %v1283_v47 = vsel %vm1088_vm13, %v1282_v23, %v1278_v24 }
 0x1f0   :  { %v1191_v49 = vrot.slane %v727_v43, %v1093_v42 }
 0x1f2   :  { %v1192_v46 = vsel %vm1095_vm14, %v1191_v49, %v1187_v41 }
 0x1f3   :  { %v969_v30 = vpop.xlane.xlu1 %968  ;;  %v1291_v0 = vsel %vm1290_vm15, %v1096_v16, %v1192_v46 }
 0x1f4   :  { %v1287_v37 = vrot.slane %v969_v30, %v1093_v42 }
 0x1f6   :  { %v1288_v10 = vsel %vm1095_vm14, %v1287_v37, %v1283_v47 }
 0x1f7   :  { %v1293_v31 = vsel %vm1292_vm0, %v1291_v0, %v1288_v10 }
 0x1f8   :  { %v1295_v38 = vadd.f32 %v1294_v5, %v1293_v31 }
 0x1fa   :  { %1296 = vst [vmem:[%s2629_s8] sm:$0x7] %v1295_v38 }

</bundles_post_ra>
